<compile_context>
chip_gen: v7x
topology: tpu7x:2x2x1
jax: 0.10.0
libtpu: 0.0.40
codegen_flags: <defaults>
</compile_context>

<pallas_src>
import functools

import jax
import jax.numpy as jnp
from jax.experimental import pallas as pl
from jax.experimental.pallas import tpu as pltpu


def _round_up(n: int, m: int) -> int:
    return ((n + m - 1) // m) * m


def _mlp_kernel(x_ref, w1_ref, b1_ref, w2_ref, b2_ref, o_ref):
    x = x_ref[...]
    # Optional bf16 compute path: cast in-vreg (no extra HBM pass in the wrapper).
    if x.dtype != w1_ref.dtype:
        x = x.astype(w1_ref.dtype)
    # Linear 1: (tb, emb) @ (emb, nhid_p) -> f32 accumulation on the MXU, f32 bias add.
    hid = jnp.dot(x, w1_ref[...], preferred_element_type=jnp.float32) + b1_ref[...]
    # Dropout (eval mode) == identity.
    # Cast the intermediate to the weight dtype so matmul-2 takes the fast (bf16)
    # MXU path when the weights are bf16; no-op for f32.  (Note: this rounds the
    # hidden activations to bf16, a documented deviation from a pure-f32 reference.)
    hid = hid.astype(w2_ref.dtype)
    # Linear 2: (tb, nhid_p) @ (nhid_p, ncls_p) -> f32 accumulation, f32 bias add.
    out = jnp.dot(hid, w2_ref[...], preferred_element_type=jnp.float32) + b2_ref[...]
    o_ref[...] = out.astype(o_ref.dtype)


def prepare_params(w1, b1, w2, b2, *, compute_dtype=None):
    """One-time weight-side preparation (call at init, NOT per forward pass).

    * Biases reshaped to (1, n) -- accepts PyTorch-style 1-D biases.
    * nhid zero-padded to a multiple of 128 (lane-dense hidden, 128-aligned K for
      the second matmul).  Padded hid columns are exactly 0 and multiply zero rows
      of w2, so results are unchanged.
    * nclasses zero-padded to a multiple of 128 only when nclasses >= 64 (for small
      class counts the unpadded narrow output is cheaper).
    * Optional bf16 cast of the matmul operands; biases stay f32.

    Returns (w1, b1, w2, b2, nclasses) where nclasses is the original class count
    (pass it as the static `nclasses=` kwarg of sent_classifier_forward).
    """
    b1 = jnp.asarray(b1).reshape(1, -1)
    b2 = jnp.asarray(b2).reshape(1, -1)
    emb, nhid = w1.shape
    nhid2, nclasses = w2.shape
    assert nhid == nhid2 and b1.shape[1] == nhid and b2.shape[1] == nclasses

    # Lane-dense hidden dim (weight-side zero padding only).
    nhid_p = _round_up(nhid, 128)
    if nhid_p != nhid:
        w1 = jnp.pad(w1, ((0, 0), (0, nhid_p - nhid)))
        b1 = jnp.pad(b1, ((0, 0), (0, nhid_p - nhid)))
        w2 = jnp.pad(w2, ((0, nhid_p - nhid), (0, 0)))

    # Class dim: pad to 128 multiple only when it is already wide.
    if nclasses >= 64 and nclasses % 128 != 0:
        ncls_p = _round_up(nclasses, 128)
        w2 = jnp.pad(w2, ((0, 0), (0, ncls_p - nclasses)))
        b2 = jnp.pad(b2, ((0, 0), (0, ncls_p - nclasses)))

    if compute_dtype is not None:
        w1 = w1.astype(compute_dtype)
        w2 = w2.astype(compute_dtype)
    b1 = b1.astype(jnp.float32)
    b2 = b2.astype(jnp.float32)
    return w1, b1, w2, b2, nclasses


def _auto_block_batch(B: int) -> int:
    # >= 2 grid steps once B > 8 (keeps both v7x TensorCores busy via the
    # "parallel" batch axis); tiles capped at 2048 rows for large B.
    bb = _round_up(max(-(-B // 4), 8), 8)
    bb = min(bb, 2048)
    return min(bb, _round_up(B, 8))


@functools.partial(jax.jit, static_argnames=("nclasses", "block_batch"))
def sent_classifier_forward(x, w1, b1, w2, b2, *, nclasses=None, block_batch=None):
    """x: (B, emb_size) -> logits: (B, nclasses).

    w1/b1/w2/b2 should come from prepare_params() (pre-padded / pre-cast once).
    nclasses: original class count if the class dim was padded (static); defaults
              to w2.shape[1].
    block_batch: batch (M) tile; None -> auto (8-aligned, <= 2048, >= 2 grid steps
                 for B > 8).
    """
    B, emb = x.shape
    nhid_p = w1.shape[1]
    ncls_p = w2.shape[1]
    if nclasses is None:
        nclasses = ncls_p
    out_dtype = x.dtype

    if block_batch is None:
        block_batch = _auto_block_batch(B)
    block_batch = min(_round_up(block_batch, 8), _round_up(B, 8))
    grid = (-(-B // block_batch),)  # ragged last block handled by Pallas masking

    itemsize = lambda a: jnp.dtype(a.dtype).itemsize
    cost = pl.CostEstimate(
        flops=2 * B * emb * nhid_p + 2 * B * nhid_p * ncls_p,
        transcendentals=0,
        bytes_accessed=(x.size * itemsize(x)
                        + w1.size * itemsize(w1) + w2.size * itemsize(w2)
                        + b1.size * itemsize(b1) + b2.size * itemsize(b2)
                        + B * ncls_p * jnp.dtype(out_dtype).itemsize),
    )

    out = pl.pallas_call(
        _mlp_kernel,
        out_shape=jax.ShapeDtypeStruct((B, ncls_p), out_dtype),
        grid_spec=pltpu.PrefetchScalarGridSpec(
            num_scalar_prefetch=0,
            grid=grid,
            in_specs=[
                # Activations: the only array tiled over the batch axis.
                pl.BlockSpec((block_batch, emb), lambda i: (i, 0)),
                # Weights / biases: constant index_map -> resident across grid steps.
                pl.BlockSpec((emb, nhid_p), lambda i: (0, 0)),
                pl.BlockSpec((1, nhid_p), lambda i: (0, 0)),
                pl.BlockSpec((nhid_p, ncls_p), lambda i: (0, 0)),
                pl.BlockSpec((1, ncls_p), lambda i: (0, 0)),
            ],
            out_specs=pl.BlockSpec((block_batch, ncls_p), lambda i: (i, 0)),
        ),
        compiler_params=pltpu.CompilerParams(
            dimension_semantics=("parallel",),
            vmem_limit_bytes=48 * 1024 * 1024,
        ),
        cost_estimate=cost,
    )(x, w1, b1, w2, b2)

    if ncls_p != nclasses:
        out = out[:, :nclasses]
    return out


def init_params(key, emb_size, nhid, nclasses, dtype=jnp.float32):
    """Deterministic init mimicking nn.Linear's uniform(-1/sqrt(fan_in), 1/sqrt(fan_in)).
    Biases are returned 1-D (PyTorch convention); prepare_params reshapes them."""
    k1, k2, k3, k4 = jax.random.split(key, 4)
    lim1 = 1.0 / jnp.sqrt(emb_size)
    lim2 = 1.0 / jnp.sqrt(nhid)
    w1 = jax.random.uniform(k1, (emb_size, nhid), dtype, -lim1, lim1)
    b1 = jax.random.uniform(k2, (nhid,), dtype, -lim1, lim1)
    w2 = jax.random.uniform(k3, (nhid, nclasses), dtype, -lim2, lim2)
    b2 = jax.random.uniform(k4, (nclasses,), dtype, -lim2, lim2)
    return w1, b1, w2, b2


if __name__ == "__main__":
    key = jax.random.PRNGKey(0)
    k_in, k_in2, k_param = jax.random.split(key, 3)

    emb_size, nhid, nclasses = 32, 64, 8
    w1, b1, w2, b2 = init_params(k_param, emb_size, nhid, nclasses)

    # --- Test 1: small batch, f32 params (nhid padded to 128 weight-side). ---
    p_w1, p_b1, p_w2, p_b2, ncls = prepare_params(w1, b1, w2, b2)
    batch = 16
    x = jax.random.normal(k_in, (batch, emb_size), jnp.float32)
    logits = sent_classifier_forward(x, p_w1, p_b1, p_w2, p_b2, nclasses=ncls)
    jax.block_until_ready(logits)
    ref = (x @ w1 + b1) @ w2 + b2
    assert logits.shape == (batch, nclasses)
    assert jnp.allclose(logits, ref, atol=1e-5, rtol=1e-5)

    # --- Test 2: non-multiple batch (ragged last grid block), bf16 operands,
    #             auto block_batch (>= 2 grid steps). ---
    q_w1, q_b1, q_w2, q_b2, ncls2 = prepare_params(w1, b1, w2, b2,
                                                   compute_dtype=jnp.bfloat16)
    batch2 = 200
    x2 = jax.random.normal(k_in2, (batch2, emb_size), jnp.float32)
    logits2 = sent_classifier_forward(x2, q_w1, q_b1, q_w2, q_b2, nclasses=ncls2)
    jax.block_until_ready(logits2)
    # Reference with bf16-rounded operands and f32 accumulation (matches kernel).
    xb = x2.astype(jnp.bfloat16).astype(jnp.float32)
    w1b = w1.astype(jnp.bfloat16).astype(jnp.float32)
    w2b = w2.astype(jnp.bfloat16).astype(jnp.float32)
    hid_ref = (xb @ w1b + b1).astype(jnp.bfloat16).astype(jnp.float32)
    ref2 = hid_ref @ w2b + b2
    assert logits2.shape == (batch2, nclasses)
    assert jnp.allclose(logits2, ref2, atol=5e-2, rtol=5e-2)

    # --- Test 3: explicit block tile, exercises a different grid shape. ---
    logits3 = sent_classifier_forward(x2, p_w1, p_b1, p_w2, p_b2,
                                      nclasses=ncls, block_batch=128)
    jax.block_until_ready(logits3)
    ref3 = (x2 @ w1 + b1) @ w2 + b2
    assert jnp.allclose(logits3, ref3, atol=1e-5, rtol=1e-5)

    print("KERNEL_OK")
</pallas_src>

<mosaic_0001>
module attributes {stable_mosaic.version = 11 : i64} {
  func.func @_mlp_kernel(%arg0: i32, %arg1: memref<8x32xf32, #tpu.memory_space<vmem>>, %arg2: memref<32x128xf32, #tpu.memory_space<vmem>>, %arg3: memref<1x128xf32, #tpu.memory_space<vmem>>, %arg4: memref<128x8xf32, #tpu.memory_space<vmem>>, %arg5: memref<1x8xf32, #tpu.memory_space<vmem>>, %arg6: memref<8x8xf32, #tpu.memory_space<vmem>>) attributes {dimension_semantics = [#tpu.dimension_semantics<parallel>], iteration_bounds = array<i64: 2>, scalar_prefetch = 0 : i64, scratch_operands = 0 : i64, tpu.core_type = #tpu.core_type<tc>, window_params = [{transform_indices = @transform_0, window_bounds = array<i64: 8, 32>}, {pipeline_mode = #tpu.pipeline_mode<synchronous>, transform_indices = @transform_1, window_bounds = array<i64: 32, 128>}, {pipeline_mode = #tpu.pipeline_mode<synchronous>, transform_indices = @transform_2, window_bounds = array<i64: 1, 128>}, {pipeline_mode = #tpu.pipeline_mode<synchronous>, transform_indices = @transform_3, window_bounds = array<i64: 128, 8>}, {pipeline_mode = #tpu.pipeline_mode<synchronous>, transform_indices = @transform_4, window_bounds = array<i64: 1, 8>}, {transform_indices = @transform_5, window_bounds = array<i64: 8, 8>}]} {
    %c0 = arith.constant 0 : index
    %c0_0 = arith.constant 0 : index
    %0 = vector.load %arg1[%c0, %c0_0] : memref<8x32xf32, #tpu.memory_space<vmem>>, vector<8x32xf32>
    %c0_1 = arith.constant 0 : index
    %c0_2 = arith.constant 0 : index
    %1 = vector.load %arg2[%c0_1, %c0_2] : memref<32x128xf32, #tpu.memory_space<vmem>>, vector<32x128xf32>
    %cst = arith.constant dense<0.000000e+00> : vector<8x128xf32>
    %2 = tpu.matmul %0, %1, %cst {dimension_numbers = #tpu.dot_dimension_numbers<[1], [0], [0], [1], [0, 0, 1, 1], [], []>} : vector<8x32xf32>, vector<32x128xf32>, vector<8x128xf32> -> vector<8x128xf32>
    %c0_3 = arith.constant 0 : index
    %c0_4 = arith.constant 0 : index
    %3 = vector.load %arg3[%c0_3, %c0_4] : memref<1x128xf32, #tpu.memory_space<vmem>>, vector<1x128xf32>
    %4 = vector.broadcast %3 : vector<1x128xf32> to vector<8x128xf32>
    %5 = arith.addf %2, %4 : vector<8x128xf32>
    %c0_5 = arith.constant 0 : index
    %c0_6 = arith.constant 0 : index
    %6 = vector.load %arg4[%c0_5, %c0_6] : memref<128x8xf32, #tpu.memory_space<vmem>>, vector<128x8xf32>
    %cst_7 = arith.constant dense<0.000000e+00> : vector<8x8xf32>
    %7 = tpu.matmul %5, %6, %cst_7 {dimension_numbers = #tpu.dot_dimension_numbers<[1], [0], [0], [1], [0, 0, 1, 1], [], []>} : vector<8x128xf32>, vector<128x8xf32>, vector<8x8xf32> -> vector<8x8xf32>
    %c0_8 = arith.constant 0 : index
    %c0_9 = arith.constant 0 : index
    %8 = vector.load %arg5[%c0_8, %c0_9] : memref<1x8xf32, #tpu.memory_space<vmem>>, vector<1x8xf32>
    %9 = vector.broadcast %8 : vector<1x8xf32> to vector<8x8xf32>
    %10 = arith.addf %7, %9 : vector<8x8xf32>
    %c0_10 = arith.constant 0 : index
    %c0_11 = arith.constant 0 : index
    %11 = vector.load %arg6[%c0_10, %c0_11] : memref<8x8xf32, #tpu.memory_space<vmem>>, vector<8x8xf32>
    tpu.vector_store %arg6[%c0_10, %c0_11], %10 {strides = array<i32>} : memref<8x8xf32, #tpu.memory_space<vmem>>, vector<8x8xf32>,
    return
  }
  func.func @transform_0(%arg0: i32) -> (i32, i32) {
    %c0_i32 = arith.constant 0 : i32
    %c0_i32_0 = arith.constant 0 : i32
    return %arg0, %c0_i32 : i32, i32
  }
  func.func @transform_1(%arg0: i32) -> (i32, i32) {
    %c0_i32 = arith.constant 0 : i32
    %c0_i32_0 = arith.constant 0 : i32
    %c0_i32_1 = arith.constant 0 : i32
    return %c0_i32, %c0_i32_0 : i32, i32
  }
  func.func @transform_2(%arg0: i32) -> (i32, i32) {
    %c0_i32 = arith.constant 0 : i32
    %c0_i32_0 = arith.constant 0 : i32
    %c0_i32_1 = arith.constant 0 : i32
    return %c0_i32, %c0_i32_0 : i32, i32
  }
  func.func @transform_3(%arg0: i32) -> (i32, i32) {
    %c0_i32 = arith.constant 0 : i32
    %c0_i32_0 = arith.constant 0 : i32
    %c0_i32_1 = arith.constant 0 : i32
    return %c0_i32, %c0_i32_0 : i32, i32
  }
  func.func @transform_4(%arg0: i32) -> (i32, i32) {
    %c0_i32 = arith.constant 0 : i32
    %c0_i32_0 = arith.constant 0 : i32
    %c0_i32_1 = arith.constant 0 : i32
    return %c0_i32, %c0_i32_0 : i32, i32
  }
  func.func @transform_5(%arg0: i32) -> (i32, i32) {
    %c0_i32 = arith.constant 0 : i32
    %c0_i32_0 = arith.constant 0 : i32
    return %arg0, %c0_i32 : i32, i32
  }
}

</mosaic_0001>

<bundles_post_ra>
// kernel: sent_classifier_forward.1
= control target key start
LH: loop header
LB: loop body
LE: loop exit
PB: predicated region body
PF: predicated region fallthrough
CT: control target
= control target key end

     0   :  { %s616_s18 = smov 0   ;;  %s706_s0 = inlined_call_operand.vmem [shape: f32[16,32], index: 0, kind: input, shape index: {}]   ;;  %s707_s1 = inlined_call_operand.vmem [shape: f32[32,128], index: 1, kind: input, shape index: {}]   ;;  %s708_s2 = inlined_call_operand.vmem [shape: f32[1,128], index: 2, kind: input, shape index: {}]   ;;  %s709_s3 = inlined_call_operand.vmem [shape: f32[128,8], index: 3, kind: input, shape index: {}]   ;;  %s710_s4 = inlined_call_operand.vmem [shape: f32[1,8], index: 4, kind: input, shape index: {}]   ;;  %s711_s5 = inlined_call_operand.vmem [shape: f32[16,8], index: 5, kind: output, shape index: {}]  }
   0x1 LB: > { %s454_s19 = sadd.s32 4294967295, %s581_s18   ;;  %p458_p0 = scmp.ge.s32.totalorder %s581_s18, 1  ;;  %s581_s18 = sphi %s616_s18, %s15_s18  }
   0x2   : > { %p186_p1 = scmp.lt.s32.totalorder %s581_s18, 3 }
   0x4   : > { %p187_p2 = pnand %p458_p0, %p186_p1 }
   0x5   : > { %v221_v0 = vld [vmem:[%s707_s1] sm:$0xff] (!%p187_p2)  ;;  %v222_v1 = vld [vmem:[%s707_s1 + $0x8] sm:$0xff] (!%p187_p2)  ;;  %v223_v2 = vld [vmem:[%s707_s1 + $0x10] sm:$0xff] (!%p187_p2)  ;;  %v583_v3 = vmov (!%p187_p2), 0.0|0.0   ;;  %vm584_vm0 = vmmov (!%p187_p2), 0   ;;  %v585_v6 = vmov (!%p187_p2), 0.0  }
   0x6   : > { %190 = sbr.rel (%p187_p2) target bundleno = 446 (0x1be), region = 40  ;;  %534 = vmatprep.subr.bf16.mxu0 (!%p187_p2), %v583_v3  ;;  %v535_v4 = vpack.c.bf16 (!%p187_p2), %v222_v1, %v221_v0  ;;  %v224_v5 = vld [vmem:[%s707_s1 + $0x18] sm:$0xff] (!%p187_p2)  ;;  %496 = vmatprep.mubr.msk.f32.mxu0 (!%p187_p2), %vm584_vm0, %v585_v6  ;;  %p212_p3 = scmp.lt.s32.totalorder (!%p187_p2), %s454_s19, 1  ;;  %v306_v7 = vld [vmem:[%s709_s3] sm:$0xff] (!%p187_p2)  ;;  %v307_v8 = vld [vmem:[%s709_s3 + $0x8] sm:$0xff] (!%p187_p2)  ;;  %vm232_vm1 = vcmask (!%p187_p2), 261120  }
   0x7   : > { %540 = vmatprep.subr.bf16.mxu1 (!%p187_p2), %v583_v3  ;;  %v541_v9 = vpack.c.bf16 (!%p187_p2), %v307_v8, %v306_v7  ;;  %v308_v10 = vld [vmem:[%s709_s3 + $0x10] sm:$0xff] (!%p187_p2)  ;;  %v309_v11 = vld [vmem:[%s709_s3 + $0x18] sm:$0xff] (!%p187_p2)  ;;  %531 = vmatprep.mubr.msk.f32.mxu1 (!%p187_p2), %vm584_vm0, %v585_v6  ;;  %v538_v12 = vpack.c.bf16 (!%p187_p2), %v224_v5, %v223_v2  ;;  %v310_v14 = vld [vmem:[%s709_s3 + $0x20] sm:$0xff] (!%p187_p2)  ;;  %vm399_vm2 = vcmask (!%p187_p2), 64512  }
   0x8   : > { %536 = vmatpush3.bf16.msra.mxu0 (!%p187_p2), %v535_v4  ;;  %v544_v13 = vpack.c.bf16 (!%p187_p2), %v309_v11, %v308_v10  ;;  %v311_v15 = vld [vmem:[%s709_s3 + $0x28] sm:$0xff] (!%p187_p2)  ;;  %v312_v18 = vld [vmem:[%s709_s3 + $0x30] sm:$0xff] (!%p187_p2)  ;;  %v313_v19 = vld [vmem:[%s709_s3 + $0x38] sm:$0xff] (!%p187_p2) }
   0x9   : > { %537 = vmatprep.subr.bf16.mxu0 (!%p187_p2), %v583_v3  ;;  %542 = vmatpush3.bf16.msra.mxu1 (!%p187_p2), %v541_v9  ;;  %v547_v17 = vpack.c.bf16 (!%p187_p2), %v311_v15, %v310_v14  ;;  %v550_v20 = vpack.c.bf16 (!%p187_p2), %v313_v19, %v312_v18  ;;  %v314_v21 = vld [vmem:[%s709_s3 + $0x40] sm:$0xff] (!%p187_p2)  ;;  %v315_v22 = vld [vmem:[%s709_s3 + $0x48] sm:$0xff] (!%p187_p2)  ;;  %v316_v24 = vld [vmem:[%s709_s3 + $0x50] sm:$0xff] (!%p187_p2) }
   0xa   : > { %543 = vmatprep.subr.bf16.mxu1 (!%p187_p2), %v583_v3  ;;  %v553_v23 = vpack.c.bf16 (!%p187_p2), %v315_v22, %v314_v21  ;;  %v317_v25 = vld [vmem:[%s709_s3 + $0x58] sm:$0xff] (!%p187_p2)  ;;  %v318_v27 = vld [vmem:[%s709_s3 + $0x60] sm:$0xff] (!%p187_p2)  ;;  %v319_v28 = vld [vmem:[%s709_s3 + $0x68] sm:$0xff] (!%p187_p2) }
   0xb   : > { %v556_v26 = vpack.c.bf16 (!%p187_p2), %v317_v25, %v316_v24  ;;  %v559_v29 = vpack.c.bf16 (!%p187_p2), %v319_v28, %v318_v27  ;;  %v320_v30 = vld [vmem:[%s709_s3 + $0x70] sm:$0xff] (!%p187_p2)  ;;  %v321_v31 = vld [vmem:[%s709_s3 + $0x78] sm:$0xff] (!%p187_p2)  ;;  %v461_v33 = vld [vmem:[%s708_s2] ss:$0 sm:$0xff] (!%p187_p2) }
   0xc   : > { %539 = vmatpush3.bf16.msra.mxu0 (!%p187_p2), %v538_v12  ;;  %v562_v32 = vpack.c.bf16 (!%p187_p2), %v321_v31, %v320_v30  ;;  %v463_v37 = vld [vmem:[%s710_s4] ss:$0 sm:$0xff] (!%p187_p2) }
   0xd   : > { %s713_s19 = smov (!%p212_p3, %s454_s19), 1  ;;  %545 = vmatpush3.bf16.msra.mxu1 %v544_v13 }
   0xe   : > { %s459_s11 = sshll.u32 %s713_s19, 3  ;;  %546 = vmatprep.subr.bf16.mxu1 %v583_v3 }
   0xf   : > { %s215_s20 = scalar_lea.vmem %s706_s0, %s459_s11  ;;  %s219_s25 = scalar_lea.vmem %s711_s5, %s459_s11 }
  0x10   : > { %v220_v16 = vld [vmem:[%s215_s20] sm:$0xff] }
  0x11   : > { %497 = vmatmul.mubr.msk.f32.vlgmr.msra.gmra.mrb[0].mxu0 %vm232_vm1, %v220_v16  ;;  %548 = vmatpush3.bf16.msra.mxu1 %v547_v17 }
  0x12   : > { %549 = vmatprep.subr.bf16.mxu1 %v583_v3 }
  0x15   : > { %551 = vmatpush3.bf16.msra.mxu1 %v550_v20 }
  0x16   : > { %552 = vmatprep.subr.bf16.mxu1 %v583_v3 }
  0x19   : > { %554 = vmatpush3.bf16.msra.mxu1 %v553_v23 }
  0x1a   : > { %555 = vmatprep.subr.bf16.mxu1 %v583_v3 }
  0x1d   : > { %557 = vmatpush3.bf16.msra.mxu1 %v556_v26 }
  0x1e   : > { %558 = vmatprep.subr.bf16.mxu1 %v583_v3 }
  0x21   : > { %560 = vmatpush3.bf16.msra.mxu1 %v559_v29 }
  0x22   : > { %561 = vmatprep.subr.bf16.mxu1 %v583_v3 }
  0x25   : > { %563 = vmatpush3.bf16.msra.mxu1 %v562_v32 }
  0xe4   : > { %v302_v34 = vpop.f32.mrb[0].mxu0 }
  0xe5   : > { %v303_v35 = vadd.f32 %v461_v33, %v302_v34  ;;  %v498_v36 = vpop.f32.mrb[1].mxu0 }
  0xe7   : > { %532 = vmatmul.mubr.f32.vlgmr.msra.gmra.mrb[0].mxu1 %v303_v35 }
 0x1ba   : > { %v395_v38 = vpop.f32.mrb[0].mxu1 }
 0x1bb   : > { %v396_v39 = vadd.f32 %v463_v37, %v395_v38  ;;  %v533_v40 = vpop.f32.mrb[1].mxu1 }
 0x1bd   : > { %400 = vst.msk [vmem:[%s219_s25] sm:$0xff] %vm399_vm2, %v396_v39 }
 0x1be PF: > { %s15_s18 = sadd.s32 1, %s581_s18  }
 0x1bf   : > { %p12_p4 = scmp.ge.s32.totalorder %s15_s18, 4  }
 0x1c1   :  { %14 = sbr.rel (!%p12_p4) target bundleno = 1 (0x1), region = 70 }

</bundles_post_ra>
